<compile_context>
chip_gen: v5e
topology: v5e:2x2
jax: 0.10.0
libtpu: 0.0.40
codegen_flags: <defaults>
</compile_context>

<pallas_src>
import functools

import jax
import jax.numpy as jnp
from jax.experimental import pallas as pl
from jax.experimental.pallas import tpu as pltpu

HIDDEN = 512                 # conv1 output channels (fixed by the module)
SOFTPLUS_THRESHOLD = 20.0


def _round_up(a, m):
    return (a + m - 1) // m * m


def _cdiv(a, b):
    return (a + b - 1) // b


@functools.lru_cache(maxsize=1)
def _vmem_capacity_bytes():
    """Per-core VMEM capacity; conservative 64 MiB (v7x) fallback."""
    try:
        cap = getattr(pltpu.get_tpu_info(), "vmem_capacity_bytes", None)
        if cap:
            return int(cap)
    except Exception:
        pass
    return 64 * 1024 * 1024


def _vmem_estimate_bytes(c, tile_s, mxu_itemsize):
    """Rough VMEM footprint of the pipelined blocks (double-buffered)."""
    return (2 * c * tile_s * 4            # x blocks, f32
            + 2 * HIDDEN * c * mxu_itemsize   # w1 blocks
            + 2 * HIDDEN * 128 * 4        # b1 column (lane-padded)
            + 2 * 8 * HIDDEN * 4          # w2 row (sublane-padded)
            + 2 * 8 * tile_s * 4          # output blocks (sublane-padded)
            + 2 * HIDDEN * tile_s * 4)    # f32 conv1 intermediate + slack


def _spatial_attention_kernel(x_ref, w1_ref, b1_ref, w2_ref, b2_ref, o_ref,
                              *, conv2_on_mxu):
    # x_ref:  (C, TILE)       f32 block of spatial positions (channels major)
    # w1_ref: (HIDDEN, C)     conv1 weight (bf16 by default)
    # b1_ref: (HIDDEN, 1)     conv1 bias column, f32
    # w2_ref: (1, HIDDEN)     conv2 weight row, f32   [(HIDDEN, 1) on VPU path]
    # b2_ref: (1,)            conv2 bias scalar, SMEM
    # o_ref:  (1, TILE)       softplus attention score (lane-dense)

    # In-register cast to the MXU dtype (no extra HBM pass in the wrapper).
    x = x_ref[...].astype(w1_ref.dtype)

    # conv1 (1x1) on the MXU with f32 accumulation; bias + ReLU in f32 on VPU.
    h = jnp.dot(w1_ref[...], x, preferred_element_type=jnp.float32)
    h = jnp.maximum(h + b1_ref[...], 0.0)

    if conv2_on_mxu:
        # conv2 (512 -> 1) as a (1, HIDDEN) @ (HIDDEN, TILE) MXU matmul in f32;
        # keeps the VALU slot (which binds at small/medium C) to bias/ReLU only.
        s = jnp.dot(w2_ref[...], h, preferred_element_type=jnp.float32) + b2_ref[0]
    else:
        # VPU fallback (e.g. v5e with large C where the MXU is the bottleneck).
        s = jnp.sum(h * w2_ref[...], axis=0, keepdims=True) + b2_ref[0]

    # Softplus(beta=1, threshold=20): x if x > 20 else log1p(exp(x))
    sp = jnp.log1p(jnp.exp(jnp.minimum(s, SOFTPLUS_THRESHOLD)))
    o_ref[...] = jnp.where(s > SOFTPLUS_THRESHOLD, s, sp).astype(o_ref.dtype)


@functools.partial(
    jax.jit,
    static_argnames=("tile", "use_bf16_mxu", "conv2_on_mxu", "min_grid_slices"))
def spatial_attention_2d(x_nchw, w1, b1, w2, b2, *, tile=2048,
                         use_bf16_mxu=True, conv2_on_mxu=True,
                         min_grid_slices=4):
    """x_nchw: (B, C, H, W) float32 -> (B, 1, H, W) float32.

    w1: (512, C) conv1 weight, b1: (512,), w2: (1, 512), b2: (1,)  (natural
    PyTorch 1x1-conv layouts with the trailing 1x1 kernel dims dropped).
    """
    B, C, H, W = x_nchw.shape
    hidden = w1.shape[0]
    S = H * W

    # NCHW already has channels major / spatial minor per batch: the kernel
    # consumes (C, spatial) blocks directly.  reshape is free (contiguous);
    # no astype / pad pass -> total activation HBM traffic is one read of x.
    x3d = x_nchw.reshape(B, C, S)

    mxu_dtype = jnp.bfloat16 if use_bf16_mxu else jnp.float32
    itm = jnp.dtype(mxu_dtype).itemsize

    # Lane-dense spatial tile (multiple of 128).
    tile_s = max(128, _round_up(min(tile, S), 128))

    # Shrink until the double-buffered blocks fit comfortably in VMEM.
    vmem_cap = _vmem_capacity_bytes()
    vmem_budget = (3 * vmem_cap) // 4
    while tile_s > 128 and 2 * _vmem_estimate_bytes(C, tile_s, itm) > vmem_budget:
        tile_s = max(128, _round_up(tile_s // 2, 128))

    # v7x has 2 TensorCores sharing the 'parallel' grid axes: make sure there
    # are enough grid slices so neither core idles (no-op on v5e/v6e).
    while tile_s > 128 and B * _cdiv(S, tile_s) < min_grid_slices:
        tile_s = max(128, _round_up(tile_s // 2, 128))

    n_tiles = _cdiv(S, tile_s)   # ragged last tile handled by Pallas masking

    w1_2d = w1.reshape(hidden, C).astype(mxu_dtype)      # (512, C)
    b1_col = b1.reshape(hidden, 1).astype(jnp.float32)   # (512, 1)
    b2_vec = b2.reshape(1).astype(jnp.float32)           # (1,) scalar -> SMEM
    if conv2_on_mxu:
        w2_arg = w2.reshape(1, hidden).astype(jnp.float32)    # (1, 512) row
        w2_spec = pl.BlockSpec((1, hidden), lambda b, i: (0, 0))
    else:
        w2_arg = w2.reshape(hidden, 1).astype(jnp.float32)    # (512, 1) column
        w2_spec = pl.BlockSpec((hidden, 1), lambda b, i: (0, 0))

    est = _vmem_estimate_bytes(C, tile_s, itm)
    vmem_limit = int(min(max(2 * est, 32 * 1024 * 1024), vmem_budget))

    # Advisory cost for XLA scheduling around the custom call.
    cost = pl.CostEstimate(
        flops=2 * B * S * hidden * (C + 1),
        transcendentals=2 * B * S,
        bytes_accessed=(B * C * S * 4 + B * S * 4
                        + hidden * C * itm + 2 * hidden * 4 + 4),
    )

    kernel = functools.partial(_spatial_attention_kernel,
                               conv2_on_mxu=conv2_on_mxu)

    out = pl.pallas_call(
        kernel,
        out_shape=jax.ShapeDtypeStruct((B, 1, S), jnp.float32),
        grid_spec=pltpu.PrefetchScalarGridSpec(
            num_scalar_prefetch=0,
            grid=(B, n_tiles),
            in_specs=[
                pl.BlockSpec((None, C, tile_s), lambda b, i: (b, 0, i)),
                pl.BlockSpec((hidden, C), lambda b, i: (0, 0)),
                pl.BlockSpec((hidden, 1), lambda b, i: (0, 0)),
                w2_spec,
                pl.BlockSpec(memory_space=pltpu.MemorySpace.SMEM),
            ],
            out_specs=pl.BlockSpec((None, 1, tile_s), lambda b, i: (b, 0, i)),
        ),
        compiler_params=pltpu.CompilerParams(
            dimension_semantics=("parallel", "parallel"),
            vmem_limit_bytes=vmem_limit,
        ),
        cost_estimate=cost,
    )(x3d, w1_2d, b1_col, w2_arg, b2_vec)

    # (B, 1, S) -> (B, 1, H, W); no transpose, no padded tail to slice off.
    return out.reshape(B, 1, H, W)


def _reference(x_nchw, w1, b1, w2, b2):
    """Pure-JAX f32 reference mirroring the PyTorch forward."""
    h = jnp.einsum("bchw,oc->bohw", x_nchw, w1) + b1[None, :, None, None]
    h = jnp.maximum(h, 0.0)
    s = jnp.einsum("bchw,oc->bohw", h, w2) + b2[None, :, None, None]
    sp = jnp.log1p(jnp.exp(jnp.minimum(s, SOFTPLUS_THRESHOLD)))
    return jnp.where(s > SOFTPLUS_THRESHOLD, s, sp)


if __name__ == "__main__":
    key = jax.random.PRNGKey(0)
    B, C, H, W = 2, 4, 16, 16

    k_x, k_w1, k_b1, k_w2, k_b2 = jax.random.split(key, 5)
    x = jax.random.normal(k_x, (B, C, H, W), dtype=jnp.float32)

    # Shapes match nn.Conv2d(in_c, 512, 1, 1) / nn.Conv2d(512, 1, 1, 1) weights
    # with the trailing 1x1 kernel dims dropped.
    w1 = jax.random.normal(k_w1, (HIDDEN, C), dtype=jnp.float32) * 0.1   # conv1.weight
    b1 = jax.random.normal(k_b1, (HIDDEN,), dtype=jnp.float32) * 0.1     # conv1.bias
    w2 = jax.random.normal(k_w2, (1, HIDDEN), dtype=jnp.float32) * 0.1   # conv2.weight
    b2 = jax.random.normal(k_b2, (1,), dtype=jnp.float32) * 0.1          # conv2.bias

    out = jax.block_until_ready(spatial_attention_2d(x, w1, b1, w2, b2))
    ref = _reference(x, w1, b1, w2, b2)

    assert out.shape == (B, 1, H, W), out.shape
    max_err = float(jnp.max(jnp.abs(out - ref)))
    # bf16 MXU inputs (f32 accumulation) vs pure-f32 reference; at this small C
    # the error is far below the bound (scale the tolerance ~sqrt(C) for large C).
    assert max_err < 2e-2, max_err

    print("KERNEL_OK")
</pallas_src>

<mosaic_0001>
module attributes {stable_mosaic.version = 11 : i64} {
  func.func @_spatial_attention_kernel(%arg0: i32, %arg1: i32, %arg2: memref<1x4x128xf32, #tpu.memory_space<vmem>>, %arg3: memref<512x4xbf16, #tpu.memory_space<vmem>>, %arg4: memref<512x1xf32, #tpu.memory_space<vmem>>, %arg5: memref<1x512xf32, #tpu.memory_space<vmem>>, %arg6: memref<1xf32, #tpu.memory_space<smem>>, %arg7: memref<1x1x128xf32, #tpu.memory_space<vmem>>) attributes {dimension_semantics = [#tpu.dimension_semantics<parallel>, #tpu.dimension_semantics<parallel>], iteration_bounds = array<i64: 2, 2>, scalar_prefetch = 0 : i64, scratch_operands = 0 : i64, tpu.core_type = #tpu.core_type<tc>, window_params = [{transform_indices = @transform_0, window_bounds = array<i64: 1, 4, 128>}, {pipeline_mode = #tpu.pipeline_mode<synchronous>, transform_indices = @transform_1, window_bounds = array<i64: 512, 4>}, {pipeline_mode = #tpu.pipeline_mode<synchronous>, transform_indices = @transform_2, window_bounds = array<i64: 512, 1>}, {pipeline_mode = #tpu.pipeline_mode<synchronous>, transform_indices = @transform_3, window_bounds = array<i64: 1, 512>}, {transform_indices = @transform_4, window_bounds = array<i64: 1>}, {transform_indices = @transform_5, window_bounds = array<i64: 1, 1, 128>}]} {
    %c0 = arith.constant 0 : index
    %c0_0 = arith.constant 0 : index
    %c0_1 = arith.constant 0 : index
    %0 = vector.load %arg2[%c0, %c0_0, %c0_1] : memref<1x4x128xf32, #tpu.memory_space<vmem>>, vector<1x4x128xf32>
    %1 = vector.shape_cast %0 : vector<1x4x128xf32> to vector<4x128xf32>
    %2 = arith.truncf %1 : vector<4x128xf32> to vector<4x128xbf16>
    %c0_2 = arith.constant 0 : index
    %c0_3 = arith.constant 0 : index
    %3 = vector.load %arg3[%c0_2, %c0_3] : memref<512x4xbf16, #tpu.memory_space<vmem>>, vector<512x4xbf16>
    %cst = arith.constant dense<0.000000e+00> : vector<512x128xf32>
    %4 = tpu.matmul %3, %2, %cst {dimension_numbers = #tpu.dot_dimension_numbers<[1], [0], [0], [1], [0, 0, 1, 1], [], []>} : vector<512x4xbf16>, vector<4x128xbf16>, vector<512x128xf32> -> vector<512x128xf32>
    %c0_4 = arith.constant 0 : index
    %c0_5 = arith.constant 0 : index
    %5 = vector.load %arg4[%c0_4, %c0_5] : memref<512x1xf32, #tpu.memory_space<vmem>>, vector<512x1xf32>
    %6 = vector.broadcast %5 : vector<512x1xf32> to vector<512x128xf32>
    %7 = arith.addf %4, %6 : vector<512x128xf32>
    %cst_6 = arith.constant 0.000000e+00 : f32
    %8 = vector.broadcast %cst_6 : f32 to vector<512x128xf32>
    %9 = arith.maximumf %7, %8 : vector<512x128xf32>
    %c0_7 = arith.constant 0 : index
    %c0_8 = arith.constant 0 : index
    %10 = vector.load %arg5[%c0_7, %c0_8] : memref<1x512xf32, #tpu.memory_space<vmem>>, vector<1x512xf32>
    %cst_9 = arith.constant dense<0.000000e+00> : vector<1x128xf32>
    %11 = tpu.matmul %10, %9, %cst_9 {dimension_numbers = #tpu.dot_dimension_numbers<[1], [0], [0], [1], [0, 0, 1, 1], [], []>} : vector<1x512xf32>, vector<512x128xf32>, vector<1x128xf32> -> vector<1x128xf32>
    %c0_10 = arith.constant 0 : index
    %12 = memref.load %arg6[%c0_10] : memref<1xf32, #tpu.memory_space<smem>>
    %13 = vector.broadcast %12 : f32 to vector<1x128xf32>
    %14 = arith.addf %11, %13 : vector<1x128xf32>
    %cst_11 = arith.constant 2.000000e+01 : f32
    %15 = vector.broadcast %cst_11 : f32 to vector<1x128xf32>
    %16 = arith.minimumf %14, %15 : vector<1x128xf32>
    %17 = math.exp %16 : vector<1x128xf32>
    %18 = math.log1p %17 : vector<1x128xf32>
    %cst_12 = arith.constant 2.000000e+01 : f32
    %19 = vector.broadcast %cst_12 : f32 to vector<1x128xf32>
    %20 = arith.cmpf ogt, %14, %19 : vector<1x128xf32>
    %21 = arith.select %20, %14, %18 : vector<1x128xi1>, vector<1x128xf32>
    %c0_13 = arith.constant 0 : index
    %c0_14 = arith.constant 0 : index
    %c0_15 = arith.constant 0 : index
    %22 = vector.load %arg7[%c0_13, %c0_14, %c0_15] : memref<1x1x128xf32, #tpu.memory_space<vmem>>, vector<1x1x128xf32>
    %23 = vector.shape_cast %22 : vector<1x1x128xf32> to vector<1x128xf32>
    %24 = vector.shape_cast %21 : vector<1x128xf32> to vector<1x1x128xf32>
    tpu.vector_store %arg7[%c0_13, %c0_14, %c0_15], %24 {strides = array<i32>} : memref<1x1x128xf32, #tpu.memory_space<vmem>>, vector<1x1x128xf32>,
    return
  }
  func.func @transform_0(%arg0: i32, %arg1: i32) -> (i32, i32, i32) {
    %c0_i32 = arith.constant 0 : i32
    %c0_i32_0 = arith.constant 0 : i32
    return %arg0, %c0_i32, %arg1 : i32, i32, i32
  }
  func.func @transform_1(%arg0: i32, %arg1: i32) -> (i32, i32) {
    %c0_i32 = arith.constant 0 : i32
    %c0_i32_0 = arith.constant 0 : i32
    %c0_i32_1 = arith.constant 0 : i32
    return %c0_i32, %c0_i32_0 : i32, i32
  }
  func.func @transform_2(%arg0: i32, %arg1: i32) -> (i32, i32) {
    %c0_i32 = arith.constant 0 : i32
    %c0_i32_0 = arith.constant 0 : i32
    %c0_i32_1 = arith.constant 0 : i32
    return %c0_i32, %c0_i32_0 : i32, i32
  }
  func.func @transform_3(%arg0: i32, %arg1: i32) -> (i32, i32) {
    %c0_i32 = arith.constant 0 : i32
    %c0_i32_0 = arith.constant 0 : i32
    %c0_i32_1 = arith.constant 0 : i32
    return %c0_i32, %c0_i32_0 : i32, i32
  }
  func.func @transform_4(%arg0: i32, %arg1: i32) -> i32 {
    %c0_i32 = arith.constant 0 : i32
    %c0_i32_0 = arith.constant 0 : i32
    return %c0_i32 : i32
  }
  func.func @transform_5(%arg0: i32, %arg1: i32) -> (i32, i32, i32) {
    %c0_i32 = arith.constant 0 : i32
    %c0_i32_0 = arith.constant 0 : i32
    return %arg0, %c0_i32, %arg1 : i32, i32, i32
  }
}

</mosaic_0001>

<bundles_post_ra>
// kernel: spatial_attention_2d.1
= control target key start
LH: loop header
LB: loop body
LE: loop exit
PB: predicated region body
PF: predicated region fallthrough
CT: control target
= control target key end

     0   :  { %s1714_s20 = smov 0   ;;  %s1716_s21 = smov 0   ;;  %s2353_s0 = inlined_call_operand.vmem [shape: f32[2,4,256], index: 0, kind: input, shape index: {}]   ;;  %s2354_s1 = inlined_call_operand.vmem [shape: bf16[512,4], index: 1, kind: input, shape index: {}]   ;;  %s2355_s2 = inlined_call_operand.vmem [shape: f32[512,1], index: 2, kind: input, shape index: {}]   ;;  %s2356_s3 = inlined_call_operand.vmem [shape: f32[1,512], index: 3, kind: input, shape index: {}]   ;;  %s2357_s4 = inlined_call_operand.<no memory space> [shape: f32[1], index: 4, kind: input, shape index: {}]   ;;  %s2358_s5 = inlined_call_operand.vmem [shape: f32[2,1,256], index: 5, kind: output, shape index: {}]  }
   0x1   :  { %10 = sst [smem:[#allocation2]] %s2357_s4  ;;  %s1718_s22 = smov 0  }
   0x2   :  { %s1720_s23 = smov 0   ;;  %s1722_s24 = smov 0  }
   0x3 LB: > { %s25_s4 = sadd.s32 1, %s1670_s22  ;;  %s28_s25 = sadd.s32 1, %s1674_s23  ;;  %s1678_s24 = sphi %s1722_s24, %s16_s24   ;;  %s1674_s23 = sphi %s1720_s23, %s2390_s23   ;;  %s1670_s22 = sphi %s1718_s22, %s2389_s22   ;;  %s1666_s21 = sphi %s1716_s21, %s2388_s21   ;;  %s1662_s20 = sphi %s1714_s20, %s2387_s20  }
   0x4   : > { %p26_p0 = scmp.ge.s32.totalorder %s25_s4, 2  ;;  %p1391_p1 = scmp.ge.s32.totalorder %s1678_s24, 1 }
   0x5   : > { %p207_p2 = scmp.lt.s32.totalorder %s1678_s24, 5 }
   0x6   : > { %s2392_s4 = smov (%p26_p0, %s25_s4), 0  ;;  %s2394_s25 = smov (!%p26_p0, %s28_s25), %s1674_s23 }
   0x7   : > { %p208_p3 = pnand %p1391_p1, %p207_p2  ;;  %p30_p4 = scmp.ge.s32.totalorder %s2394_s25, 2 }
   0x9   : > { %s2396_s25 = smov (%p30_p4, %s2394_s25), 0  ;;  %211 = sbr.rel (%p208_p3) target bundleno = 495 (0x1ef), region = 40 }
   0xe   : > { %v326_v0 = vld [vmem:[%s2355_s2 + $0x20] sm:$0xff]  ;;  %v324_v1 = vld [vmem:[%s2355_s2 + $0x10] sm:$0xff]  ;;  %p240_p5 = scmp.lt.s32.totalorder %s1666_s21, 1  ;;  %p242_p6 = scmp.lt.s32.totalorder %s1662_s20, 1  ;;  %v1680_v3 = vmov 0   ;;  %v327_v4 = vld [vmem:[%s2355_s2 + $0x28] sm:$0xff] }
   0xf   : > { %v322_v2 = vld [vmem:[%s2355_s2] sm:$0xff]  ;;  %1635 = vset.pattern.permute.xlu2 %v1680_v3  ;;  %1634 = vset.pattern.permute.xlu1 %v1680_v3  ;;  %v325_v5 = vld [vmem:[%s2355_s2 + $0x18] sm:$0xff]  ;;  %v323_v6 = vld [vmem:[%s2355_s2 + $0x8] sm:$0xff]  ;;  %vm963_vm0 = vcmask 1041408   ;;  %vm866_vm1 = vcmask 31744  }
  0x10   : > { %1633 = vset.pattern.permute.xlu0 %v1680_v3  ;;  %408 = vperm.xlu2 %1635, %v326_v0   ;;  %s2398_s21 = smov (!%p240_p5, %s1666_s21), 1  ;;  %s2400_s20 = smov (!%p242_p6, %s1662_s20), 1  ;;  %v1557_v10 = vld [vmem:[%s2354_s1] sm:$0xff]  ;;  %v1571_v11 = vld [vmem:[%s2354_s1 + $0x70] sm:$0xff]  ;;  %v1580_v12 = vld [vmem:[%s2354_s1 + $0xb8] sm:$0xff] }
  0x11   : > { %398 = vperm.xlu1 %1634, %v324_v1   ;;  %388 = vperm.xlu0 %1633, %v322_v2   ;;  %s1392_s7 = sshll.u32 %s2398_s21, 1  ;;  %v1567_v13 = vld [vmem:[%s2354_s1 + $0x50] sm:$0xff]  ;;  %v330_v14 = vld [vmem:[%s2355_s2 + $0x40] sm:$0xff]  ;;  %v329_v15 = vld [vmem:[%s2355_s2 + $0x38] sm:$0xff]  ;;  %s1201_s21 = sld [smem:[#allocation2]] }
  0x12   : > { %s1753_s8 = sadd.s32 %s1392_s7, %s2400_s20  ;;  %v328_v16 = vld [vmem:[%s2355_s2 + $0x30] sm:$0xff]  ;;  %v333_v17 = vld [vmem:[%s2355_s2 + $0x58] sm:$0xff]  ;;  %v331_v19 = vld [vmem:[%s2355_s2 + $0x48] sm:$0xff] }
  0x13   : > { %s1393_s9 = sshll.u32 %s1753_s8, 2  ;;  %v332_v18 = vld [vmem:[%s2355_s2 + $0x50] sm:$0xff]  ;;  %v1558_v20 = vld [vmem:[%s2354_s1 + $0x8] sm:$0xff]  ;;  %v1572_v21 = vld [vmem:[%s2354_s1 + $0x78] sm:$0xff]  ;;  %s254_s28 = scalar_lea.vmem %s2358_s5, %s1753_s8 }
  0x14   : > { %s247_s14 = scalar_lea.vmem %s2353_s0, %s1393_s9  ;;  %v1581_v22 = vld [vmem:[%s2354_s1 + $0xc0] sm:$0xff]  ;;  %v1568_v23 = vld [vmem:[%s2354_s1 + $0x58] sm:$0xff]  ;;  %v336_v24 = vld [vmem:[%s2355_s2 + $0x70] sm:$0xff] }
  0x15   : > { %v256_v7 = vld [vmem:[%s247_s14] sm:$0xf]  ;;  %v335_v25 = vld [vmem:[%s2355_s2 + $0x68] sm:$0xff]  ;;  %v337_v29 = vld [vmem:[%s2355_s2 + $0x78] sm:$0xff] }
  0x16   : > { %v257_v8 = vpack.c.bf16 %v256_v7, %v256_v7  ;;  %v334_v26 = vld [vmem:[%s2355_s2 + $0x60] sm:$0xff]  ;;  %v339_v27 = vld [vmem:[%s2355_s2 + $0x88] sm:$0xff]  ;;  %v1559_v30 = vld [vmem:[%s2354_s1 + $0x10] sm:$0xff] }
  0x17   : > { %v338_v28 = vld [vmem:[%s2355_s2 + $0x80] sm:$0xff]  ;;  %v1582_v32 = vld [vmem:[%s2354_s1 + $0xc8] sm:$0xff]  ;;  %v341_v35 = vld [vmem:[%s2355_s2 + $0x98] sm:$0xff] }
  0x18   : > { %413 = vperm.xlu2 %1635, %v327_v4   ;;  %v965_v9 = vsel %vm963_vm0, %v257_v8, 0  ;;  %v1573_v31 = vld [vmem:[%s2354_s1 + $0x80] sm:$0xff]  ;;  %v340_v36 = vld [vmem:[%s2355_s2 + $0x90] sm:$0xff]  ;;  %v345_v37 = vld [vmem:[%s2355_s2 + $0xb8] sm:$0xff] }
  0x19   : > { %403 = vperm.xlu1 %1634, %v325_v5   ;;  %393 = vperm.xlu0 %1633, %v323_v6   ;;  %v1569_v33 = vld [vmem:[%s2354_s1 + $0x60] sm:$0xff]  ;;  %v344_v38 = vld [vmem:[%s2355_s2 + $0xb0] sm:$0xff]  ;;  %v343_v39 = vld [vmem:[%s2355_s2 + $0xa8] sm:$0xff] }
  0x1a   : > { %974 = vmatpush.bf16.msra.mxu0 %v965_v9  ;;  %1590 = vmatpush.bf16.msra.mxu2 %v965_v9  ;;  %v342_v34 = vld [vmem:[%s2355_s2 + $0xa0] sm:$0xff]  ;;  %v1560_v40 = vld [vmem:[%s2354_s1 + $0x18] sm:$0xff]  ;;  %v1574_v41 = vld [vmem:[%s2354_s1 + $0x88] sm:$0xff] }
  0x1b   : > { %1591 = vmatpush.bf16.msra.mxu3 %v965_v9  ;;  %1589 = vmatpush.bf16.msra.mxu1 %v965_v9  ;;  %v1583_v42 = vld [vmem:[%s2354_s1 + $0xd0] sm:$0xff]  ;;  %v1570_v43 = vld [vmem:[%s2354_s1 + $0x68] sm:$0xff]  ;;  %v353_v45 = vld [vmem:[%s2355_s2 + $0xf8] sm:$0xff] }
  0x1c   : > { %v352_v44 = vld [vmem:[%s2355_s2 + $0xf0] sm:$0xff]  ;;  %v346_v46 = vld [vmem:[%s2355_s2 + $0xc0] sm:$0xff]  ;;  %v351_v48 = vld [vmem:[%s2355_s2 + $0xe8] sm:$0xff] }
  0x1d   : > { %1523 = vmatmul.msk.bf16.vlgmr.msra.gmra.mxu0 %vm866_vm1, %v1557_v10  ;;  %1537 = vmatmul.msk.bf16.vlgmr.msra.gmra.mxu2 %vm866_vm1, %v1571_v11  ;;  %v368_v47 = vld [vmem:[%s2355_s2 + $0x170] sm:$0xff]  ;;  %v369_v49 = vld [vmem:[%s2355_s2 + $0x178] sm:$0xff]  ;;  %v1561_v50 = vld [vmem:[%s2354_s1 + $0x20] sm:$0xff] }
  0x1e   : > { %1546 = vmatmul.msk.bf16.vlgmr.msra.gmra.mxu3 %vm866_vm1, %v1580_v12  ;;  %1533 = vmatmul.msk.bf16.vlgmr.msra.gmra.mxu1 %vm866_vm1, %v1567_v13  ;;  %v1575_v51 = vld [vmem:[%s2354_s1 + $0x90] sm:$0xff]  ;;  %v1584_v52 = vld [vmem:[%s2354_s1 + $0xd8] sm:$0xff]  ;;  %v367_v54 = vld [vmem:[%s2355_s2 + $0x168] sm:$0xff] }
  0x1f   : > { %v349_v53 = vld [vmem:[%s2355_s2 + $0xd8] sm:$0xff]  ;;  %v350_v55 = vld [vmem:[%s2355_s2 + $0xe0] sm:$0xff]  ;;  %v348_v57 = vld [vmem:[%s2355_s2 + $0xd0] sm:$0xff] }
  0x20   : > { %428 = vperm.xlu2 %1635, %v330_v14   ;;  %v365_v56 = vld [vmem:[%s2355_s2 + $0x158] sm:$0xff]  ;;  %v366_v58 = vld [vmem:[%s2355_s2 + $0x160] sm:$0xff]  ;;  %v1562_v59 = vld [vmem:[%s2354_s1 + $0x28] sm:$0xff] }
  0x21   : > { %423 = vperm.xlu1 %1634, %v329_v15   ;;  %418 = vperm.xlu0 %1633, %v328_v16   ;;  %v1576_v60 = vld [vmem:[%s2354_s1 + $0x98] sm:$0xff]  ;;  %v1585_v61 = vld [vmem:[%s2354_s1 + $0xe0] sm:$0xff]  ;;  %v364_v62 = vld [vmem:[%s2355_s2 + $0x150] sm:$0xff] }
  0x22   : > { %v347_v0 = vld [vmem:[%s2355_s2 + $0xc8] sm:$0xff]  ;;  %v385_v1 = vld [vmem:[%s2355_s2 + $0x1f8] sm:$0xff]  ;;  %v384_v4 = vld [vmem:[%s2355_s2 + $0x1f0] sm:$0xff] }
  0x23   : > { %v383_v2 = vld [vmem:[%s2355_s2 + $0x1e8] sm:$0xff]  ;;  %v1563_v6 = vld [vmem:[%s2354_s1 + $0x30] sm:$0xff]  ;;  %v1577_v7 = vld [vmem:[%s2354_s1 + $0xa0] sm:$0xff] }
  0x24   : > { %v363_v3 = vld [vmem:[%s2355_s2 + $0x148] sm:$0xff]  ;;  %v361_v9 = vld [vmem:[%s2355_s2 + $0x138] sm:$0xff]  ;;  %v382_v10 = vld [vmem:[%s2355_s2 + $0x1e0] sm:$0xff] }
  0x25   : > { %v1586_v8 = vld [vmem:[%s2354_s1 + $0xe8] sm:$0xff]  ;;  %v362_v11 = vld [vmem:[%s2355_s2 + $0x140] sm:$0xff]  ;;  %v380_v15 = vld [vmem:[%s2355_s2 + $0x1d0] sm:$0xff] }
  0x26   : > { %v360_v16 = vld [vmem:[%s2355_s2 + $0x130] sm:$0xff] }
  0x28   : > { %443 = vperm.xlu2 %1635, %v333_v17   ;;  %v381_v17 = vld [vmem:[%s2355_s2 + $0x1d8] sm:$0xff] }
  0x29   : > { %438 = vperm.xlu1 %1634, %v332_v18   ;;  %433 = vperm.xlu0 %1633, %v331_v19   ;;  %v1564_v18 = vld [vmem:[%s2354_s1 + $0x38] sm:$0xff]  ;;  %v1578_v19 = vld [vmem:[%s2354_s1 + $0xa8] sm:$0xff] }
  0x2d   : > { %1524 = vmatmul.msk.bf16.gmra.mxu0 %vm866_vm1, %v1558_v20  ;;  %1538 = vmatmul.msk.bf16.gmra.mxu2 %vm866_vm1, %v1572_v21  ;;  %v1587_v20 = vld [vmem:[%s2354_s1 + $0xf0] sm:$0xff] }
  0x2e   : > { %1547 = vmatmul.msk.bf16.gmra.mxu3 %vm866_vm1, %v1581_v22  ;;  %1534 = vmatmul.msk.bf16.gmra.mxu1 %vm866_vm1, %v1568_v23 }
  0x30   : > { %458 = vperm.xlu2 %1635, %v336_v24   ;;  %v358_v24 = vld [vmem:[%s2355_s2 + $0x120] sm:$0xff] }
  0x31   : > { %453 = vperm.xlu1 %1634, %v335_v25   ;;  %448 = vperm.xlu0 %1633, %v334_v26   ;;  %v379_v25 = vld [vmem:[%s2355_s2 + $0x1c8] sm:$0xff] }
  0x32   : > { %v359_v26 = vld [vmem:[%s2355_s2 + $0x128] sm:$0xff] }
  0x38   : > { %473 = vperm.xlu2 %1635, %v339_v27  }
  0x39   : > { %468 = vperm.xlu1 %1634, %v338_v28   ;;  %463 = vperm.xlu0 %1633, %v337_v29   ;;  %v377_v29 = vld [vmem:[%s2355_s2 + $0x1b8] sm:$0xff] }
  0x3d   : > { %1525 = vmatmul.msk.bf16.gmra.mxu0 %vm866_vm1, %v1559_v30  ;;  %1539 = vmatmul.msk.bf16.gmra.mxu2 %vm866_vm1, %v1573_v31  ;;  %v357_v31 = vld [vmem:[%s2355_s2 + $0x118] sm:$0xff] }
  0x3e   : > { %1548 = vmatmul.msk.bf16.gmra.mxu3 %vm866_vm1, %v1582_v32  ;;  %1535 = vmatmul.msk.bf16.gmra.mxu1 %vm866_vm1, %v1569_v33  ;;  %v378_v32 = vld [vmem:[%s2355_s2 + $0x1c0] sm:$0xff] }
  0x3f   : > { %v1565_v33 = vld [vmem:[%s2354_s1 + $0x40] sm:$0xff] }
  0x40   : > { %488 = vperm.xlu2 %1635, %v342_v34   ;;  %v1579_v34 = vld [vmem:[%s2354_s1 + $0xb0] sm:$0xff] }
  0x41   : > { %483 = vperm.xlu1 %1634, %v341_v35   ;;  %478 = vperm.xlu0 %1633, %v340_v36   ;;  %v1588_v36 = vld [vmem:[%s2354_s1 + $0xf8] sm:$0xff] }
  0x48   : > { %503 = vperm.xlu2 %1635, %v345_v37  }
  0x49   : > { %498 = vperm.xlu1 %1634, %v344_v38   ;;  %493 = vperm.xlu0 %1633, %v343_v39  }
  0x4d   : > { %1526 = vmatmul.msk.bf16.gmra.mxu0 %vm866_vm1, %v1560_v40  ;;  %1540 = vmatmul.msk.bf16.gmra.mxu2 %vm866_vm1, %v1574_v41  ;;  %v355_v41 = vld [vmem:[%s2355_s2 + $0x108] sm:$0xff] }
  0x4e   : > { %1549 = vmatmul.msk.bf16.gmra.mxu3 %vm866_vm1, %v1583_v42  ;;  %1536 = vmatmul.msk.bf16.gmra.mxu1 %vm866_vm1, %v1570_v43  ;;  %v376_v42 = vld [vmem:[%s2355_s2 + $0x1b0] sm:$0xff] }
  0x4f   : > { %v356_v43 = vld [vmem:[%s2355_s2 + $0x110] sm:$0xff] }
  0x50   : > { %538 = vperm.xlu2 %1635, %v352_v44  }
  0x51   : > { %543 = vperm.xlu1 %1634, %v353_v45   ;;  %508 = vperm.xlu0 %1633, %v346_v46  }
  0x58   : > { %618 = vperm.xlu2 %1635, %v368_v47  }
  0x59   : > { %533 = vperm.xlu1 %1634, %v351_v48   ;;  %623 = vperm.xlu0 %1633, %v369_v49  }
  0x5d   : > { %1527 = vmatmul.msk.bf16.gmra.mxu0 %vm866_vm1, %v1561_v50  ;;  %1541 = vmatmul.msk.bf16.gmra.mxu2 %vm866_vm1, %v1575_v51 }
  0x5e   : > { %1550 = vmatmul.msk.bf16.gmra.mxu3 %vm866_vm1, %v1584_v52  ;;  %v374_v52 = vld [vmem:[%s2355_s2 + $0x1a0] sm:$0xff] }
  0x60   : > { %523 = vperm.xlu2 %1635, %v349_v53   ;;  %v354_v53 = vld [vmem:[%s2355_s2 + $0x100] sm:$0xff] }
  0x61   : > { %613 = vperm.xlu1 %1634, %v367_v54   ;;  %528 = vperm.xlu0 %1633, %v350_v55   ;;  %v375_v54 = vld [vmem:[%s2355_s2 + $0x1a8] sm:$0xff] }
  0x68   : > { %603 = vperm.xlu2 %1635, %v365_v56  }
  0x69   : > { %518 = vperm.xlu1 %1634, %v348_v57   ;;  %608 = vperm.xlu0 %1633, %v366_v58   ;;  %v1566_v57 = vld [vmem:[%s2354_s1 + $0x48] sm:$0xff] }
  0x6a   : > { %v1948_v63 = vpop.permute.xlu2 %408 }
  0x6d   : > { %1528 = vmatmul.msk.bf16.gmra.mxu0 %vm866_vm1, %v1562_v59  ;;  %1542 = vmatmul.msk.bf16.gmra.mxu2 %vm866_vm1, %v1576_v60 }
  0x6e   : > { %1551 = vmatmul.msk.bf16.gmra.mxu3 %vm866_vm1, %v1585_v61 }
  0x70   : > { %598 = vperm.xlu2 %1635, %v364_v62  }
  0x71   : > { %513 = vperm.xlu1 %1634, %v347_v0   ;;  %703 = vperm.xlu0 %1633, %v385_v1   ;;  %v371_v1 = vld [vmem:[%s2355_s2 + $0x188] sm:$0xff] }
  0x72   : > { %v1966_v5 = vpop.permute.xlu2 %413 }
  0x78   : > { %693 = vperm.xlu2 %1635, %v383_v2   ;;  %v372_v2 = vld [vmem:[%s2355_s2 + $0x190] sm:$0xff] }
  0x79   : > { %593 = vperm.xlu1 %1634, %v363_v3   ;;  %698 = vperm.xlu0 %1633, %v384_v4   ;;  %v373_v3 = vld [vmem:[%s2355_s2 + $0x198] sm:$0xff] }
  0x7a   : > { %v1989_v12 = vpop.permute.xlu2 %428 }
  0x7d   : > { %1529 = vmatmul.msk.bf16.gmra.mxu0 %vm866_vm1, %v1563_v6  ;;  %1543 = vmatmul.msk.bf16.gmra.mxu2 %vm866_vm1, %v1577_v7 }
  0x7e   : > { %1552 = vmatmul.msk.bf16.gmra.mxu3 %vm866_vm1, %v1586_v8 }
  0x80   : > { %583 = vperm.xlu2 %1635, %v361_v9  }
  0x81   : > { %688 = vperm.xlu1 %1634, %v382_v10   ;;  %588 = vperm.xlu0 %1633, %v362_v11  }
  0x82   : > { %v2013_v23 = vpop.permute.xlu2 %443 }
  0x83   : > { %v1991_v13 = vpop.permute.xlu1 %398  ;;  %v389_v14 = vpop.permute.xlu0 %388 }
  0x88   : > { %678 = vperm.xlu2 %1635, %v380_v15  }
  0x89   : > { %578 = vperm.xlu1 %1634, %v360_v16   ;;  %683 = vperm.xlu0 %1633, %v381_v17  }
  0x8a   : > { %v2034_v30 = vpop.permute.xlu2 %458 }
  0x8b   : > { %v2011_v21 = vpop.permute.xlu1 %403  ;;  %v394_v22 = vpop.permute.xlu0 %393 }
  0x8d   : > { %1530 = vmatmul.msk.bf16.gmra.mxu0 %vm866_vm1, %v1564_v18  ;;  %1544 = vmatmul.msk.bf16.gmra.mxu2 %vm866_vm1, %v1578_v19 }
  0x8e   : > { %1553 = vmatmul.msk.bf16.gmra.mxu3 %vm866_vm1, %v1587_v20 }
  0x90   : > { %568 = vperm.xlu2 %1635, %v358_v24  }
  0x91   : > { %673 = vperm.xlu1 %1634, %v379_v25   ;;  %573 = vperm.xlu0 %1633, %v359_v26  }
  0x92   : > { %v2071_v44 = vpop.permute.xlu2 %473 }
  0x93   : > { %v2027_v27 = vpop.permute.xlu1 %423  ;;  %v2029_v28 = vpop.permute.xlu0 %418 }
  0x98   : > { %663 = vperm.xlu2 %1635, %v377_v29  }
  0x99   : > { %563 = vperm.xlu1 %1634, %v357_v31   ;;  %668 = vperm.xlu0 %1633, %v378_v32  }
  0x9a   : > { %v976_v35 = vpop.f32.mrf.mxu0  ;;  %v2097_v58 = vpop.permute.xlu2 %488 }
  0x9b   : > { %v2051_v37 = vpop.permute.xlu1 %438  ;;  %v2053_v38 = vpop.permute.xlu0 %433  ;;  %v2055_v39 = vadd.f32 %v976_v35, %v389_v14  ;;  %v370_v14 = vld [vmem:[%s2355_s2 + $0x180] sm:$0xff] }
  0x9c   : > { %v2057_v40 = vpop.f32.mrf.mxu1 }
  0x9d   : > { %1531 = vmatmul.msk.bf16.gmra.mxu0 %vm866_vm1, %v1565_v33  ;;  %1545 = vmatmul.msk.bf16.gmra.mxu2 %vm866_vm1, %v1579_v34 }
  0x9e   : > { %1554 = vmatmul.msk.bf16.gmra.mxu3 %vm866_vm1, %v1588_v36 }
  0xa0   : > { %553 = vperm.xlu2 %1635, %v355_v41   ;;  %v2073_v45 = vpop.f32.mrf.mxu2 }
  0xa1   : > { %658 = vperm.xlu1 %1634, %v376_v42   ;;  %558 = vperm.xlu0 %1633, %v356_v43   ;;  %v2075_v46 = vpop.f32.mrf.mxu3 }
  0xa2   : > { %v978_v47 = vpop.f32.mrf.mxu0 }
  0xa3   : > { %v2077_v48 = vpop.permute.xlu1 %453  ;;  %v2079_v49 = vpop.permute.xlu0 %448  ;;  %v2081_v50 = vadd.f32 %v978_v47, %v394_v22 }
  0xa4   : > { %v2083_v51 = vpop.f32.mrf.mxu1 }
  0xa8   : > { %648 = vperm.xlu2 %1635, %v374_v52   ;;  %v1048_v55 = vpop.f32.mrf.mxu2 }
  0xa9   : > { %548 = vperm.xlu1 %1634, %v354_v53   ;;  %653 = vperm.xlu0 %1633, %v375_v54   ;;  %v1093_v56 = vpop.f32.mrf.mxu3 }
  0xaa   : > { %v981_v59 = vpop.f32.mrf.mxu0 }
  0xab   : > { %v2099_v60 = vpop.permute.xlu1 %468  ;;  %v2101_v61 = vpop.permute.xlu0 %463  ;;  %v2104_v62 = vadd.f32 %v981_v59, %v1991_v13 }
  0xac   : > { %v2106_v0 = vpop.f32.mrf.mxu1  ;;  %v2129_v13 = vpop.permute.xlu2 %503 }
  0xad   : > { %1532 = vmatmul.msk.bf16.gmra.mxu0 %vm866_vm1, %v1566_v57 }
  0xb0   : > { %633 = vperm.xlu2 %1635, %v371_v1   ;;  %v1051_v4 = vpop.f32.mrf.mxu2 }
  0xb1   : > { %638 = vperm.xlu1 %1634, %v372_v2   ;;  %643 = vperm.xlu0 %1633, %v373_v3   ;;  %v2118_v6 = vpop.f32.mrf.mxu3 }
  0xb2   : > { %2359 = vst [vmem:[#allocation3_spill] sm:$0xff] %v2118_v6  ;;  %v983_v7 = vpop.f32.mrf.mxu0 }
  0xb3   : > { %v2120_v8 = vpop.permute.xlu1 %483  ;;  %v2122_v9 = vpop.permute.xlu0 %478  ;;  %v2125_v10 = vadd.f32 %v983_v7, %v2011_v21 }
  0xb4   : > { %v2127_v11 = vpop.f32.mrf.mxu1  ;;  %v539_v21 = vpop.permute.xlu2 %538 }
  0xb5   : > { %v1052_v31 = vadd.f32 %v1051_v4, %v539_v21 }
  0xb7   : > { %v1166_v35 = vmax.f32 %v1052_v31, 0.0 }
  0xb8   : > { %v1053_v15 = vpop.f32.mrf.mxu2 }
  0xb9   : > { %628 = vperm.xlu0 %1633, %v370_v14   ;;  %v2134_v16 = vpop.f32.mrf.mxu3 }
  0xba   : > { %2360 = vst [vmem:[#allocation4_spill] sm:$0xff] %v2134_v16  ;;  %v2136_v17 = vpop.f32.mrf.mxu0 }
  0xbb   : > { %v2138_v18 = vpop.permute.xlu1 %498  ;;  %v2140_v19 = vpop.permute.xlu0 %493 }
  0xbc   : > { %v1036_v20 = vpop.f32.mrf.mxu1  ;;  %v619_v41 = vpop.permute.xlu2 %618 }
  0xbd   : > { %v1092_v54 = vadd.f32 %v2075_v46, %v619_v41 }
  0xbf   : > { %v1182_v4 = vmax.f32 %v1092_v54, 0.0 }
  0xc0   : > { %v2142_v22 = vpop.f32.mrf.mxu2 }
  0xc1   : > { %2361 = vst [vmem:[#allocation5_spill] sm:$0xff] %v2142_v22  ;;  %v2144_v24 = vpop.f32.mrf.mxu3 }
  0xc2   : > { %2362 = vst [vmem:[#allocation6_spill] sm:$0xff] %v2144_v24  ;;  %v2146_v25 = vpop.f32.mrf.mxu0 }
  0xc3   : > { %v544_v26 = vpop.permute.xlu1 %543  ;;  %v509_v29 = vpop.permute.xlu0 %508 }
  0xc4   : > { %v1054_v32 = vadd.f32 %v1053_v15, %v544_v26  ;;  %v1038_v33 = vpop.f32.mrf.mxu1  ;;  %v524_v46 = vpop.permute.xlu2 %523 }
  0xc6   : > { %v1167_v34 = vmax.f32 %v1054_v32, 0.0 }
  0xc8   : > { %1232 = vmatpush.msrb.mxu2 %v1167_v34  ;;  %v2148_v36 = vpop.f32.mrf.mxu2 }
  0xc9   : > { %2363 = vst [vmem:[#allocation7_spill] sm:$0xff] %v2148_v36  ;;  %v2150_v42 = vpop.f32.mrf.mxu3 }
  0xca   : > { %2364 = vst [vmem:[#allocation8_spill] sm:$0xff] %v2150_v42  ;;  %1233 = vmatpush.msrb.mxu2 %v1166_v35  ;;  %v991_v43 = vpop.f32.mrf.mxu0 }
  0xcb   : > { %v534_v47 = vpop.permute.xlu1 %533  ;;  %v624_v52 = vpop.permute.xlu0 %623  ;;  %v2153_v53 = vadd.f32 %v991_v43, %v2029_v28 }
  0xcc   : > { %v1049_v57 = vadd.f32 %v1048_v55, %v534_v47  ;;  %v1094_v59 = vadd.f32 %v1093_v56, %v624_v52  ;;  %v1041_v1 = vpop.f32.mrf.mxu1 }
  0xce   : > { %v1165_v2 = vmax.f32 %v1049_v57, 0.0  ;;  %v1183_v3 = vmax.f32 %v1094_v59, 0.0 }
  0xd0   : > { %1234 = vmatpush.msrb.mxu2 %v1165_v2  ;;  %v2156_v7 = vpop.f32.mrf.mxu2  ;;  %1252 = vmatpush.msrb.mxu3 %v1183_v3  ;;  %v1037_v2 = vadd.f32 %v1036_v20, %v509_v29  ;;  %v1029_v20 = vadd.f32 %v2083_v51, %v2140_v19 }
  0xd1   : > { %2365 = vst [vmem:[#allocation9_spill] sm:$0xff] %v2156_v7  ;;  %v2158_v14 = vpop.f32.mrf.mxu3 }
  0xd2   : > { %2366 = vst [vmem:[#allocation10_spill] sm:$0xff] %v2158_v14  ;;  %v993_v15 = vpop.f32.mrf.mxu0  ;;  %1253 = vmatpush.msrb.mxu3 %v1182_v4  ;;  %v1034_v4 = vadd.f32 %v2127_v11, %v2129_v13  ;;  %v1027_v11 = vadd.f32 %v2057_v40, %v2097_v58 }
  0xd3   : > { %v2160_v21 = vpop.permute.xlu1 %613  ;;  %v529_v28 = vpop.permute.xlu0 %528  ;;  %v2163_v26 = vadd.f32 %v993_v15, %v2027_v27 }
  0xd4   : > { %v1047_v55 = vadd.f32 %v2073_v45, %v529_v28  ;;  %v1043_v56 = vpop.f32.mrf.mxu1 }
  0xd5   : > { %v1044_v31 = vadd.f32 %v1043_v56, %v524_v46  ;;  %v1160_v46 = vmax.f32 %v1037_v2, 0.0 }
  0xd6   : > { %v1164_v32 = vmax.f32 %v1047_v55, 0.0 }
  0xd7   : > { %v1163_v34 = vmax.f32 %v1044_v31, 0.0  ;;  %v1159_v31 = vmax.f32 %v1034_v4, 0.0 }
  0xd8   : > { %1235 = vmatpush.msrb.mxu2 %v1164_v32  ;;  %v2166_v35 = vpop.f32.mrf.mxu2 }
  0xd9   : > { %2367 = vst [vmem:[#allocation11_spill] sm:$0xff] %v2166_v35  ;;  %v2168_v41 = vpop.f32.mrf.mxu3 }
  0xda   : > { %2368 = vst [vmem:[#allocation12_spill] sm:$0xff] %v2168_v41  ;;  %v2170_v43 = vpop.f32.mrf.mxu0  ;;  %1236 = vmatpush.msrb.mxu2 %v1163_v34 }
  0xdb   : > { %v519_v47 = vpop.permute.xlu1 %518  ;;  %v2180_v28 = vpop.permute.xlu0 %608 }
  0xdc   : > { %v1042_v52 = vadd.f32 %v1041_v1, %v519_v47  ;;  %v1032_v1 = vadd.f32 %v2106_v0, %v2138_v18  ;;  %v2192_v0 = vpop.permute.xlu2 %603  ;;  %v1156_v18 = vmax.f32 %v1027_v11, 0.0 }
  0xde   : > { %v1162_v54 = vmax.f32 %v1042_v52, 0.0  ;;  %v1158_v13 = vmax.f32 %v1032_v1, 0.0 }
  0xe0   : > { %1237 = vmatpush.msrb.mxu2 %v1162_v54  ;;  %v2172_v27 = vpop.f32.mrf.mxu2 }
  0xe1   : > { %v2174_v57 = vpop.f32.mrf.mxu3 }
  0xe2   : > { %2369 = vst [vmem:[#allocation13_spill] sm:$0xff] %v2174_v57  ;;  %v2176_v45 = vpop.f32.mrf.mxu0 }
  0xe3   : > { %v514_v59 = vpop.permute.xlu1 %513  ;;  %v2196_v34 = vpop.permute.xlu0 %703 }
  0xe4   : > { %v1039_v3 = vadd.f32 %v1038_v33, %v514_v59  ;;  %v1157_v33 = vmax.f32 %v1029_v20, 0.0  ;;  %v2202_v52 = vpop.permute.xlu2 %598 }
  0xe6   : > { %v1161_v15 = vmax.f32 %v1039_v3, 0.0 }
  0xe8   : > { %1238 = vmatpush.msrb.mxu2 %v1161_v15  ;;  %v2184_v55 = vpop.f32.mrf.mxu2 }
  0xe9   : > { %v2186_v56 = vpop.f32.mrf.mxu3 }
  0xea   : > { %2370 = vst [vmem:[#allocation14_spill] sm:$0xff] %v2186_v56  ;;  %1239 = vmatpush.msrb.mxu2 %v1160_v46  ;;  %v1001_v29 = vpop.f32.mrf.mxu0 }
  0xeb   : > { %v2206_v54 = vpop.permute.xlu0 %698  ;;  %v2210_v2 = vpop.permute.xlu1 %593 }
  0xec   : > { %1240 = vmatpush.msrb.mxu2 %v1159_v31  ;;  %v2214_v15 = vpop.permute.xlu2 %693 }
  0xee   : > { %1241 = vmatpush.msrb.mxu2 %v1158_v13 }
  0xf0   : > { %1242 = vmatpush.msrb.mxu2 %v1157_v33  ;;  %v2194_v32 = vpop.f32.mrf.mxu2 }
  0xf1   : > { %v2198_v47 = vpop.f32.mrf.mxu3 }
  0xf2   : > { %2371 = vst [vmem:[#allocation15_spill] sm:$0xff] %v2198_v47  ;;  %1243 = vmatpush.msrb.mxu2 %v1156_v18  ;;  %v1003_v51 = vpop.f32.mrf.mxu0 }
  0xf3   : > { %v2216_v1 = vpop.permute.xlu0 %588  ;;  %v2222_v11 = vpop.permute.xlu1 %688  ;;  %v1004_v7 = vadd.f32 %v1003_v51, %v2013_v23  ;;  %v997_v23 = vadd.f32 %v2170_v43, %v1989_v12  ;;  %v1143_v12 = vmax.f32 %v2163_v26, 0.0  ;;  %v1142_v43 = vmax.f32 %v2153_v53, 0.0 }
  0xf4   : > { %v2224_v13 = vpop.permute.xlu2 %583 }
  0xf8   : > { %v2200_v19 = vpop.f32.mrf.mxu2 }
  0xf9   : > { %v2204_v40 = vpop.f32.mrf.mxu3 }
  0xfa   : > { %2372 = vst [vmem:[#allocation16_spill] sm:$0xff] %v2204_v40  ;;  %v1006_v58 = vpop.f32.mrf.mxu0 }
  0xfb   : > { %v2226_v33 = vpop.permute.xlu0 %683  ;;  %v2232_v14 = vpop.permute.xlu1 %578  ;;  %v1007_v56 = vadd.f32 %v1006_v58, %v2079_v49  ;;  %v999_v49 = vadd.f32 %v2176_v45, %v2053_v38  ;;  %v989_v38 = vadd.f32 %v2146_v25, %v1966_v5 }
  0xfc   : > { %v2235_v22 = vpop.permute.xlu2 %678 }
  0xfd   : > { %v1141_v58 = vmax.f32 %v989_v38, 0.0 }
 0x100   : > { %v2208_v59 = vpop.f32.mrf.mxu2 }
 0x101   : > { %v2212_v3 = vpop.f32.mrf.mxu3 }
 0x102   : > { %v1008_v4 = vpop.f32.mrf.mxu0 }
 0x103   : > { %v1009_v41 = vadd.f32 %v1008_v4, %v2077_v48  ;;  %v2239_v40 = vpop.permute.xlu0 %573  ;;  %v1002_v48 = vadd.f32 %v1001_v29, %v2051_v37 }
 0x104   : > { %v2252_v51 = vpop.permute.xlu2 %568 }
 0x105   : > { %v1149_v35 = vmax.f32 %v1009_v41, 0.0 }
 0x108   : > { %v2218_v46 = vpop.f32.mrf.mxu2 }
 0x109   : > { %v2220_v31 = vpop.f32.mrf.mxu3 }
 0x10a   : > { %v1011_v20 = vpop.f32.mrf.mxu0 }
 0x10b   : > { %v1012_v24 = vadd.f32 %v1011_v20, %v2034_v30 }
 0x10c   : > { %v2266_v25 = vpop.permute.xlu2 %663 }
 0x10d   : > { %v1150_v36 = vmax.f32 %v1012_v24, 0.0  ;;  %v1147_v24 = vmax.f32 %v1004_v7, 0.0  ;;  %v987_v7 = vadd.f32 %v2136_v17, %v1948_v63  ;;  %v1139_v63 = vmax.f32 %v2125_v10, 0.0 }
 0x10e   : > { %v1137_v10 = vmax.f32 %v2081_v50, 0.0 }
 0x10f   : > { %v1140_v5 = vmax.f32 %v987_v7, 0.0  ;;  %v2373_v7 = vld [vmem:[#allocation11_spill] sm:$0xff] }
 0x110   : > { %v1081_v18 = vpop.f32.mrf.mxu2 }
 0x111   : > { %v2228_v6 = vpop.f32.mrf.mxu3  ;;  %v1082_v17 = vadd.f32 %v1081_v18, %v2202_v52  ;;  %v1136_v18 = vmax.f32 %v2055_v39, 0.0 }
 0x112   : > { %v1013_v16 = vpop.f32.mrf.mxu0 }
 0x113   : > { %v1014_v42 = vadd.f32 %v1013_v16, %v2101_v61  ;;  %v1148_v16 = vmax.f32 %v1007_v56, 0.0  ;;  %v1144_v56 = vmax.f32 %v997_v23, 0.0  ;;  %v1178_v52 = vmax.f32 %v1082_v17, 0.0 }
 0x114   : > { %v554_v39 = vpop.permute.xlu2 %553 }
 0x115   : > { %v1151_v57 = vmax.f32 %v1014_v42, 0.0  ;;  %v1146_v42 = vmax.f32 %v1002_v48, 0.0 }
 0x117   : > { %1212 = vmatpush.msrb.mxu1 %v1151_v57  ;;  %v2250_v57 = vpop.permute.xlu1 %673 }
 0x118   : > { %v1083_v47 = vpop.f32.mrf.mxu2 }
 0x119   : > { %v2241_v30 = vpop.f32.mrf.mxu3  ;;  %1213 = vmatpush.msrb.mxu1 %v1150_v36  ;;  %v1145_v36 = vmax.f32 %v999_v49, 0.0  ;;  %v1084_v26 = vadd.f32 %v1083_v47, %v2192_v0  ;;  %v1077_v47 = vadd.f32 %v2208_v59, %v2216_v1 }
 0x11a   : > { %v2243_v61 = vpop.f32.mrf.mxu0  ;;  %v1129_v59 = vadd.f32 %v2241_v30, %v2214_v15  ;;  %v1069_v15 = vadd.f32 %v2184_v55, %v2239_v40  ;;  %v1067_v55 = vadd.f32 %v2172_v27, %v2252_v51  ;;  %v2374_v51 = vld [vmem:[#allocation16_spill] sm:$0xff] }
 0x11b   : > { %1214 = vmatpush.msrb.mxu1 %v1149_v35  ;;  %v2254_v35 = vpop.permute.xlu0 %668  ;;  %v1017_v38 = vadd.f32 %v2243_v61, %v2099_v60  ;;  %v1122_v60 = vadd.f32 %v2212_v3, %v2235_v22  ;;  %v2375_v22 = vld [vmem:[#allocation9_spill] sm:$0xff] }
 0x11d   : > { %1215 = vmatpush.msrb.mxu1 %v1148_v16 }
 0x11f   : > { %1216 = vmatpush.msrb.mxu1 %v1147_v24  ;;  %v2262_v4 = vpop.permute.xlu1 %563 }
 0x120   : > { %v1086_v41 = vpop.f32.mrf.mxu2 }
 0x121   : > { %1217 = vmatpush.msrb.mxu1 %v1146_v42  ;;  %v1131_v29 = vpop.f32.mrf.mxu3  ;;  %v1087_v20 = vadd.f32 %v1086_v41, %v2180_v28  ;;  %v1079_v28 = vadd.f32 %v2218_v46, %v2210_v2  ;;  %v1179_v42 = vmax.f32 %v1084_v26, 0.0  ;;  %v1074_v2 = vadd.f32 %v2200_v19, %v2224_v13 }
 0x122   : > { %v1018_v37 = vpop.f32.mrf.mxu0 }
 0x123   : > { %1218 = vmatpush.msrb.mxu1 %v1145_v36  ;;  %v2271_v53 = vpop.permute.xlu0 %558  ;;  %v1180_v24 = vmax.f32 %v1087_v20, 0.0  ;;  %v1177_v46 = vmax.f32 %v1079_v28, 0.0  ;;  %v1019_v19 = vadd.f32 %v1018_v37, %v2071_v44  ;;  %v2302_v44 = vld [vmem:[%s2356_s3] sm:$0xf] }
 0x124   : > { %v1205_v37 = vperm.slane %v2302_v44, 1  ;;  %v1204_v27 = vperm.slane %v2302_v44, 0  ;;  %v1062_v3 = vadd.f32 %v2375_v22, %v2271_v53 }
 0x125   : > { %1219 = vmatpush.msrb.mxu1 %v1144_v56  ;;  %v1176_v56 = vmax.f32 %v1077_v47, 0.0 }
 0x126   : > { %v1170_v53 = vmax.f32 %v1062_v3, 0.0 }
 0x127   : > { %1220 = vmatpush.msrb.mxu1 %v1143_v12  ;;  %v2284_v36 = vpop.permute.xlu1 %658  ;;  %v1173_v12 = vmax.f32 %v1069_v15, 0.0  ;;  %v2386_v15 = vld [vmem:[#allocation3_spill] sm:$0xff] }
 0x128   : > { %v1088_v45 = vpop.f32.mrf.mxu2 }
 0x129   : > { %v1089_v48 = vadd.f32 %v1088_v45, %v2160_v21  ;;  %1221 = vmatpush.msrb.mxu1 %v1142_v43  ;;  %v1133_v23 = vpop.f32.mrf.mxu3  ;;  %v1138_v21 = vmax.f32 %v2104_v62, 0.0  ;;  %v1132_v62 = vadd.f32 %v1131_v29, %v2206_v54  ;;  %v1072_v54 = vadd.f32 %v2194_v32, %v2232_v14 }
 0x12a   : > { %v1021_v16 = vpop.f32.mrf.mxu0  ;;  %v1134_v0 = vadd.f32 %v1133_v23, %v2196_v34  ;;  %v1175_v29 = vmax.f32 %v1074_v2, 0.0  ;;  %v1197_v32 = vmax.f32 %v1129_v59, 0.0  ;;  %v1119_v43 = vadd.f32 %v2374_v51, %v2250_v57  ;;  %v2378_v57 = vld [vmem:[#allocation14_spill] sm:$0xff]  ;;  %v2379_v23 = vld [vmem:[#allocation5_spill] sm:$0xff]  ;;  %v2383_v59 = vld [vmem:[#allocation8_spill] sm:$0xff] }
 0x12b   : > { %v1181_v49 = vmax.f32 %v1089_v48, 0.0  ;;  %1222 = vmatpush.msrb.mxu1 %v1141_v58  ;;  %v1022_v34 = vadd.f32 %v1021_v16, %v2122_v9  ;;  %v1127_v9 = vadd.f32 %v2228_v6, %v2222_v11  ;;  %v654_v30 = vpop.permute.xlu0 %653  ;;  %v1124_v6 = vadd.f32 %v2220_v31, %v2226_v33 }
 0x12c   : > { %v1199_v1 = vmax.f32 %v1134_v0, 0.0  ;;  %v1174_v40 = vmax.f32 %v1072_v54, 0.0  ;;  %v1153_v11 = vmax.f32 %v1019_v19, 0.0  ;;  %v1064_v31 = vadd.f32 %v2373_v7, %v2262_v4  ;;  %v2376_v4 = vld [vmem:[#allocation15_spill] sm:$0xff]  ;;  %v2384_v54 = vld [vmem:[#allocation6_spill] sm:$0xff] }
 0x12d   : > { %1223 = vmatpush.msrb.mxu1 %v1140_v5  ;;  %1254 = vmatpush.msrb.mxu3 %v1181_v49  ;;  %v1154_v14 = vmax.f32 %v1022_v34, 0.0  ;;  %v1196_v61 = vmax.f32 %v1127_v9, 0.0  ;;  %v1152_v33 = vmax.f32 %v1017_v38, 0.0  ;;  %v1195_v45 = vmax.f32 %v1124_v6, 0.0  ;;  %v2377_v5 = vld [vmem:[#allocation7_spill] sm:$0xff]  ;;  %v649_v49 = vpop.permute.xlu2 %648 }
 0x12e   : > { %v1172_v58 = vmax.f32 %v1067_v55, 0.0  ;;  %v1194_v48 = vmax.f32 %v1122_v60, 0.0  ;;  %v1117_v16 = vadd.f32 %v2376_v4, %v2254_v35  ;;  %v1059_v26 = vadd.f32 %v2377_v5, %v554_v39  ;;  %v2380_v35 = vld [vmem:[#allocation13_spill] sm:$0xff] }
 0x12f   : > { %1224 = vmatpush.msrb.mxu1 %v1139_v63  ;;  %1255 = vmatpush.msrb.mxu3 %v1180_v24  ;;  %v549_v20 = vpop.permute.xlu1 %548  ;;  %v1171_v63 = vmax.f32 %v1064_v31, 0.0  ;;  %v1114_v17 = vadd.f32 %v2378_v57, %v2266_v25  ;;  %v1193_v24 = vmax.f32 %v1119_v43, 0.0  ;;  %v1112_v0 = vadd.f32 %v2380_v35, %v2284_v36 }
 0x130   : > { %v1206_v25 = vperm.slane %v2302_v44, 2 }
 0x131   : > { %1225 = vmatpush.msrb.mxu1 %v1138_v21  ;;  %1256 = vmatpush.msrb.mxu3 %v1179_v42  ;;  %v1057_v21 = vadd.f32 %v2379_v23, %v549_v20  ;;  %v1192_v42 = vmax.f32 %v1117_v16, 0.0  ;;  %v1191_v47 = vmax.f32 %v1114_v17, 0.0 }
 0x132   : > { %v1023_v41 = vpop.f32.mrf.mxu0 }
 0x133   : > { %v1024_v50 = vadd.f32 %v1023_v41, %v2120_v8  ;;  %1226 = vmatpush.msrb.mxu1 %v1137_v10  ;;  %1257 = vmatpush.msrb.mxu3 %v1178_v52  ;;  %v1198_v8 = vmax.f32 %v1132_v62, 0.0  ;;  %v644_v28 = vpop.permute.xlu0 %643  ;;  %v1169_v10 = vmax.f32 %v1059_v26, 0.0  ;;  %v2381_v52 = vld [vmem:[#allocation12_spill] sm:$0xff]  ;;  %v1168_v62 = vmax.f32 %v1057_v21, 0.0  ;;  %v2382_v41 = vld [vmem:[#allocation10_spill] sm:$0xff] }
 0x134   : > { %v1107_v2 = vadd.f32 %v2382_v41, %v649_v49  ;;  %v1104_v36 = vadd.f32 %v2383_v59, %v644_v28 }
 0x135   : > { %v1155_v13 = vmax.f32 %v1024_v50, 0.0  ;;  %1227 = vmatpush.msrb.mxu1 %v1136_v18  ;;  %1258 = vmatpush.msrb.mxu3 %v1177_v46  ;;  %v1109_v18 = vadd.f32 %v2381_v52, %v654_v30  ;;  %v1190_v46 = vmax.f32 %v1112_v0, 0.0 }
 0x136   : > { %1228 = vmatmul.f32.vlgmr.msrb.gmra.mxu1 %v1204_v27  ;;  %v1188_v39 = vmax.f32 %v1107_v2, 0.0 }
 0x137   : > { %1272 = vmatpush.msra.mxu1 %v1199_v1  ;;  %1244 = vmatpush.msrb.mxu2 %v1155_v13  ;;  %v639_v34 = vpop.permute.xlu1 %638  ;;  %v1189_v50 = vmax.f32 %v1109_v18, 0.0  ;;  %v634_v1 = vpop.permute.xlu2 %633  ;;  %v2385_v13 = vld [vmem:[#allocation4_spill] sm:$0xff] }
 0x138   : > { %1259 = vmatpush.msrb.mxu3 %v1176_v56  ;;  %v1102_v56 = vadd.f32 %v2384_v54, %v639_v34  ;;  %v1099_v9 = vadd.f32 %v2385_v13, %v634_v1 }
 0x139   : > { %1273 = vmatpush.msra.mxu1 %v1198_v8  ;;  %1245 = vmatpush.msrb.mxu2 %v1154_v14  ;;  %v1187_v8 = vmax.f32 %v1104_v36, 0.0  ;;  %v1207_v14 = vperm.slane %v2302_v44, 3 }
 0x13a   : > { %1260 = vmatpush.msrb.mxu3 %v1175_v29  ;;  %v1186_v29 = vmax.f32 %v1102_v56, 0.0  ;;  %v1185_v38 = vmax.f32 %v1099_v9, 0.0 }
 0x13b   : > { %1274 = vmatpush.msra.mxu1 %v1197_v32  ;;  %1246 = vmatpush.msrb.mxu2 %v1153_v11  ;;  %v629_v19 = vpop.permute.xlu0 %628  ;;  %v1202_v32 = vstv %s1201_s21 }
 0x13c   : > { %1261 = vmatpush.msrb.mxu3 %v1174_v40  ;;  %v1097_v30 = vadd.f32 %v2386_v15, %v629_v19 }
 0x13d   : > { %1275 = vmatpush.msra.mxu1 %v1196_v61  ;;  %1247 = vmatpush.msrb.mxu2 %v1152_v33 }
 0x13e   : > { %1262 = vmatpush.msrb.mxu3 %v1173_v12  ;;  %1248 = vmatmul.f32.vlgmr.msrb.gmra.mxu2 %v1205_v37  ;;  %v1184_v6 = vmax.f32 %v1097_v30, 0.0 }
 0x13f   : > { %1276 = vmatpush.msra.mxu1 %v1195_v45 }
 0x140   : > { %1263 = vmatpush.msrb.mxu3 %v1172_v58 }
 0x141   : > { %1277 = vmatpush.msra.mxu1 %v1194_v48 }
 0x142   : > { %1264 = vmatpush.msrb.mxu3 %v1171_v63 }
 0x143   : > { %1278 = vmatpush.msra.mxu1 %v1193_v24 }
 0x144   : > { %1265 = vmatpush.msrb.mxu3 %v1170_v53 }
 0x145   : > { %1279 = vmatpush.msra.mxu1 %v1192_v42 }
 0x146   : > { %1266 = vmatpush.msrb.mxu3 %v1169_v10 }
 0x147   : > { %1280 = vmatpush.msra.mxu1 %v1191_v47 }
 0x148   : > { %1267 = vmatpush.msrb.mxu3 %v1168_v62 }
 0x149   : > { %1281 = vmatpush.msra.mxu1 %v1190_v46  ;;  %1268 = vmatmul.f32.vlgmr.msrb.gmra.mxu3 %v1206_v25 }
 0x14b   : > { %1282 = vmatpush.msra.mxu1 %v1189_v50 }
 0x14d   : > { %1283 = vmatpush.msra.mxu1 %v1188_v39 }
 0x14f   : > { %1284 = vmatpush.msra.mxu1 %v1187_v8 }
 0x151   : > { %1285 = vmatpush.msra.mxu1 %v1186_v29 }
 0x153   : > { %1286 = vmatpush.msra.mxu1 %v1185_v38 }
 0x155   : > { %1287 = vmatpush.msra.mxu1 %v1184_v6 }
 0x156   : > { %1288 = vmatmul.f32.vlgmr.msra.gmra.mxu1 %v1207_v14 }
 0x1b3   : > { %v1229_v55 = vpop.f32.mrf.mxu1 }
 0x1b4   : > { %v1230_v40 = vadd.f32 %v1229_v55, %v1202_v32 }
 0x1c1   : > { %v1249_v11 = vpop.f32.mrf.mxu2 }
 0x1c2   : > { %v1250_v60 = vadd.f32 %v1249_v11, %v1230_v40 }
 0x1cc   : > { %v1269_v61 = vpop.f32.mrf.mxu3 }
 0x1cd   : > { %v1270_v37 = vadd.f32 %v1269_v61, %v1250_v60 }
 0x1d3   : > { %v1289_v12 = vpop.f32.mrf.mxu1 }
 0x1d4   : > { %v1290_v7 = vadd.f32 %v1289_v12, %v1270_v37 }
 0x1d6   : > { %v1292_v31 = vmin.f32 %v1290_v7, 20.0  ;;  %vm1304_vm3 = vcmp.gt.f32.partialorder %v1290_v7, 20.0 }
 0x1d8   : > { %v1293_v33 = vmul.f32 1.442695, %v1292_v31 }
 0x1da   : > { %1636 = vpow2.f32 %v1293_v33 }
 0x1e0   : > { %v1637_v27 = vpop.eup %1636 }
 0x1e1   : > { %v1295_v44 = vadd.f32 1.0, %v1637_v27  ;;  %v1298_v51 = vmul.f32 -0.5, %v1637_v27  ;;  %v1301_v45 = vand.u32 2147483647, %v1637_v27 }
 0x1e3   : > { %1638 = vlog2.f32 %v1295_v44  ;;  %v1299_v43 = vadd.f32 1.0, %v1298_v51  ;;  %vm1302_vm2 = vcmp.lt.f32.partialorder %v1301_v45, 0.0004427343 }
 0x1e5   : > { %v1300_v3 = vmul.f32 %v1637_v27, %v1299_v43 }
 0x1e9   : > { %v1639_v58 = vpop.eup %1638 }
 0x1ea   : > { %v1297_v22 = vmul.f32 0.6931472, %v1639_v58 }
 0x1ec   : > { %v1303_v20 = vsel %vm1302_vm2, %v1300_v3, %v1297_v22 }
 0x1ed   : > { %v1305_v48 = vsel %vm1304_vm3, %v1290_v7, %v1303_v20 }
 0x1ee   : > { %1306 = vst [vmem:[%s254_s28] sm:$0x1] %v1305_v48 }
 0x1ef PF: > { %s16_s24 = sadd.s32 1, %s1678_s24   ;;  %s2387_s20 = smov %s1670_s22 }
 0x1f0   : > { %p13_p7 = scmp.ge.s32.totalorder %s16_s24, 6   ;;  %s2388_s21 = smov %s1674_s23 }
 0x1f1   : > { %s2389_s22 = smov %s2392_s4  ;;  %s2390_s23 = smov %s2396_s25 }
 0x1f2   :  { %15 = sbr.rel (!%p13_p7) target bundleno = 3 (0x3), region = 70 }

</bundles_post_ra>
